<compile_context>
chip_gen: v7x
topology: tpu7x:2x2x1
jax: 0.10.0
libtpu: 0.0.40
codegen_flags: <defaults>
</compile_context>

<pallas_src>
import functools

import jax
import jax.numpy as jnp
from jax.experimental import pallas as pl
from jax.experimental.pallas import tpu as pltpu


def _round_up(x, m):
    return (x + m - 1) // m * m


def _cdiv(a, b):
    return (a + b - 1) // b


# ----------------------------------------------------------------------------
# Pallas kernel: fused 3x3 conv + bias + ReLU + masked global-average-pool,
# accumulated over flattened-spatial tiles, TB images per grid step.
# ----------------------------------------------------------------------------
def encoder_pool_kernel(x_ref, halo_ref, w_ref, b_ref, mask_ref, out_ref,
                        *, tb, pt, wp):
    # x_ref   : (TB, C, PT)   flat padded-image tile (lanes = flat spatial)
    # halo_ref: (TB, C, HB)   next HB flat elements (3x3 window halo)
    # w_ref   : (9, F, C)     conv weight, one (F, C) slab per tap
    # b_ref   : (F, 1)        conv bias
    # mask_ref: (1, PT)       1/(H*W) at valid output positions, else 0
    # out_ref : (1, F, TB)    pooled features, accumulated across tiles
    t = pl.program_id(1)

    @pl.when(t == 0)
    def _init():
        out_ref[...] = jnp.zeros_like(out_ref)

    w_all = w_ref[...]          # (9, F, C)
    bias = b_ref[...]           # (F, 1)
    mask = mask_ref[...]        # (1, PT), already scaled by 1/(H*W)

    contribs = []
    for i in range(tb):
        # flat window [t*PT, t*PT + PT + HB) of image i of this block
        xw = jnp.concatenate([x_ref[i], halo_ref[i]], axis=-1)    # (C, PT+HB)
        acts = None
        for dh in range(3):
            for dw in range(3):
                off = dh * wp + dw
                xs = xw[:, off:off + pt]                          # (C, PT)
                d = jnp.dot(w_all[dh * 3 + dw], xs,
                            preferred_element_type=jnp.float32)   # (F, PT) MXU
                acts = d if acts is None else acts + d
        acts = jnp.maximum(acts + bias, 0.0)                      # bias + ReLU
        # masked mean contribution of this spatial tile
        contribs.append(jnp.sum(acts * mask, axis=-1, keepdims=True))  # (F, 1)

    out_ref[...] = out_ref[...] + jnp.concatenate(contribs, axis=-1)[None]


# ----------------------------------------------------------------------------
# Wrappers
# ----------------------------------------------------------------------------
def _encoder_features(x_nchw, w_conv, b_conv, *, pt_target):
    """Synthetic encoder over N images: 3x3 conv(same) + ReLU + GAP -> (N, F)."""
    N, C, H, W = x_nchw.shape
    F = w_conv.shape[0]
    Wp = W + 2
    Hp = H + 2

    # HB: halo length (>= 2*Wp + 2 tap reach), lane-aligned to 128.
    # PT: flat spatial tile (lanes); a multiple of HB so the halo BlockSpec
    #     lands on a block boundary.  Size PT per generation: keep the
    #     double-buffered main block (2 * TB * 8 * PT * 4 B) well inside the
    #     scoped VMEM budget (16 MiB v5e default / 32 MiB v6e / 64 MiB v7x).
    HB = _round_up(2 * Wp + 2, 128)
    PT = max(HB, _round_up(min(pt_target, H * Wp), HB))
    NT = _cdiv(H * Wp, PT)
    L_pad = NT * PT + HB

    TB = 2 if N % 2 == 0 else 1           # images per grid step (2B is even)
    NB = N // TB

    # Wrapper prep: one pad pass + free reshape.  No transpose, no im2col.
    xp = jnp.pad(x_nchw, ((0, 0), (0, 0), (1, 1), (1, 1)))      # (N,C,Hp,Wp)
    xf = xp.reshape(N, C, Hp * Wp)
    xf = jnp.pad(xf, ((0, 0), (0, 0), (0, L_pad - Hp * Wp)))    # (N,C,L_pad)

    # taps: w_taps[dh*3 + dw] = w_conv[:, :, dh, dw]  -> (9, F, C)
    w_taps = jnp.transpose(w_conv, (2, 3, 0, 1)).reshape(9, F, C)
    b_col = b_conv.reshape(F, 1).astype(jnp.float32)

    # Validity mask over flat output positions, pre-scaled by 1/(H*W) so the
    # accumulated masked sum IS the global average pool (pad columns / pad
    # rows / tile overrun positions contribute exactly 0).
    p = jnp.arange(NT * PT, dtype=jnp.int32)
    valid = ((p % Wp) < W) & (p < H * Wp)
    mask = (valid.astype(jnp.float32) / float(H * W)).reshape(1, NT * PT)

    halo_step = PT // HB
    kernel = functools.partial(encoder_pool_kernel, tb=TB, pt=PT, wp=Wp)

    feat_t = pl.pallas_call(
        kernel,
        out_shape=jax.ShapeDtypeStruct((NB, F, TB), jnp.float32),
        grid_spec=pltpu.PrefetchScalarGridSpec(
            num_scalar_prefetch=0,
            grid=(NB, NT),                 # images "parallel", tiles last
            in_specs=[
                pl.BlockSpec((TB, C, PT), lambda n, t: (n, 0, t)),
                pl.BlockSpec((TB, C, HB),
                             lambda n, t: (n, 0, (t + 1) * halo_step)),
                pl.BlockSpec((9, F, C), lambda n, t: (0, 0, 0)),
                pl.BlockSpec((F, 1), lambda n, t: (0, 0)),
                pl.BlockSpec((1, PT), lambda n, t: (0, t)),
            ],
            out_specs=pl.BlockSpec((1, F, TB), lambda n, t: (n, 0, 0)),
        ),
        compiler_params=pltpu.CompilerParams(
            dimension_semantics=("parallel", "arbitrary"),
            vmem_limit_bytes=32 * 1024 * 1024,
        ),
    )(xf, xf, w_taps, b_col, mask)

    # (NB, F, TB) -> (N, F)
    return feat_t.transpose(0, 2, 1).reshape(N, F)


@functools.partial(jax.jit, static_argnames=("pt_target",))
def oct_cross_view_forward(Himg, Vimg, w_conv, b_conv, w_fc, b_fc,
                           *, pt_target=4096):
    """Forward of OCTCrossViewModel_A (both views fused into one kernel call)."""
    B = Himg.shape[0]
    x = jnp.concatenate([Himg, Vimg], axis=0)              # (2B, C, H, W)
    feat = _encoder_features(x.astype(jnp.float32), w_conv, b_conv,
                             pt_target=pt_target)           # (2B, F)
    img_feature = feat[:B] + feat[B:]                       # hEnc + vEnc
    # Tiny classification head: plain JAX (per perf review, a dedicated
    # pallas_call for a (B, F) @ (F, classes) matmul is pure overhead).
    logits = img_feature @ w_fc + b_fc.reshape(1, -1)
    return logits


# ----------------------------------------------------------------------------
# Independent pure-JAX reference for a sanity check
# ----------------------------------------------------------------------------
def _reference(Himg, Vimg, w_conv, b_conv, w_fc, b_fc):
    def enc(x):
        y = jax.lax.conv_general_dilated(
            x, w_conv, window_strides=(1, 1), padding=((1, 1), (1, 1)),
            dimension_numbers=("NCHW", "OIHW", "NCHW"))
        y = jnp.maximum(y + b_conv.reshape(1, -1, 1, 1), 0.0)
        return jnp.mean(y, axis=(2, 3))
    feat = enc(Himg) + enc(Vimg)
    return feat @ w_fc + b_fc.reshape(1, -1)


if __name__ == "__main__":
    # Small shapes: batch=2, channels=4, spatial=16x16, n_features=32, classes=4
    B, C_in, H, W = 2, 4, 16, 16
    n_features = 32
    class_number = 4

    key = jax.random.PRNGKey(0)
    k1, k2, k3, k4, k5, k6 = jax.random.split(key, 6)

    Himg = jax.random.normal(k1, (B, C_in, H, W), dtype=jnp.float32)
    Vimg = jax.random.normal(k2, (B, C_in, H, W), dtype=jnp.float32)

    # Synthetic encoder / head parameters (PyTorch conv layout OIHW).
    w_conv = 0.1 * jax.random.normal(
        k3, (n_features, C_in, 3, 3), dtype=jnp.float32)
    b_conv = 0.01 * jax.random.normal(k4, (n_features,), dtype=jnp.float32)
    w_fc = 0.1 * jax.random.normal(
        k5, (n_features, class_number), dtype=jnp.float32)
    b_fc = 0.01 * jax.random.normal(k6, (class_number,), dtype=jnp.float32)

    # pt_target=128 forces NT=3 spatial tiles at this small size so the
    # accumulating / masking path of the kernel is actually exercised.
    out = oct_cross_view_forward(Himg, Vimg, w_conv, b_conv, w_fc, b_fc,
                                 pt_target=128)
    out = jax.block_until_ready(out)

    ref = _reference(Himg, Vimg, w_conv, b_conv, w_fc, b_fc)
    assert out.shape == (B, class_number)
    assert jnp.allclose(out, ref, atol=1e-4, rtol=1e-3), (out, ref)

    print("KERNEL_OK")
</pallas_src>

<mosaic_0001>
module attributes {stable_mosaic.version = 11 : i64} {
  func.func @encoder_pool_kernel(%arg0: i32, %arg1: i32, %arg2: memref<2x4x128xf32, #tpu.memory_space<vmem>>, %arg3: memref<2x4x128xf32, #tpu.memory_space<vmem>>, %arg4: memref<9x32x4xf32, #tpu.memory_space<vmem>>, %arg5: memref<32x1xf32, #tpu.memory_space<vmem>>, %arg6: memref<1x128xf32, #tpu.memory_space<vmem>>, %arg7: memref<1x32x2xf32, #tpu.memory_space<vmem>>) attributes {dimension_semantics = [#tpu.dimension_semantics<parallel>, #tpu.dimension_semantics<arbitrary>], iteration_bounds = array<i64: 2, 3>, scalar_prefetch = 0 : i64, scratch_operands = 0 : i64, tpu.core_type = #tpu.core_type<tc>, window_params = [{transform_indices = @transform_0, window_bounds = array<i64: 2, 4, 128>}, {transform_indices = @transform_1, window_bounds = array<i64: 2, 4, 128>}, {pipeline_mode = #tpu.pipeline_mode<synchronous>, transform_indices = @transform_2, window_bounds = array<i64: 9, 32, 4>}, {pipeline_mode = #tpu.pipeline_mode<synchronous>, transform_indices = @transform_3, window_bounds = array<i64: 32, 1>}, {transform_indices = @transform_4, window_bounds = array<i64: 1, 128>}, {transform_indices = @transform_5, window_bounds = array<i64: 1, 32, 2>}]} {
    %c0_i32 = arith.constant 0 : i32
    %0 = arith.cmpi eq, %arg1, %c0_i32 : i32
    %1 = arith.extui %0 : i1 to i32
    %c0_i32_0 = arith.constant 0 : i32
    %2 = arith.cmpi ne, %1, %c0_i32_0 : i32
    scf.if %2 {
      %cst_45 = arith.constant 0.000000e+00 : f32
      %125 = vector.broadcast %cst_45 : f32 to vector<1x32x2xf32>
      %c0_46 = arith.constant 0 : index
      %c0_47 = arith.constant 0 : index
      %c0_48 = arith.constant 0 : index
      %126 = vector.load %arg7[%c0_46, %c0_47, %c0_48] : memref<1x32x2xf32, #tpu.memory_space<vmem>>, vector<1x32x2xf32>
      tpu.vector_store %arg7[%c0_46, %c0_47, %c0_48], %125 {strides = array<i32>} : memref<1x32x2xf32, #tpu.memory_space<vmem>>, vector<1x32x2xf32>,
    } else {
    }
    %c0 = arith.constant 0 : index
    %c0_1 = arith.constant 0 : index
    %c0_2 = arith.constant 0 : index
    %3 = vector.load %arg4[%c0, %c0_1, %c0_2] : memref<9x32x4xf32, #tpu.memory_space<vmem>>, vector<9x32x4xf32>
    %c0_3 = arith.constant 0 : index
    %c0_4 = arith.constant 0 : index
    %4 = vector.load %arg5[%c0_3, %c0_4] : memref<32x1xf32, #tpu.memory_space<vmem>>, vector<32x1xf32>
    %c0_5 = arith.constant 0 : index
    %c0_6 = arith.constant 0 : index
    %5 = vector.load %arg6[%c0_5, %c0_6] : memref<1x128xf32, #tpu.memory_space<vmem>>, vector<1x128xf32>
    %c0_7 = arith.constant 0 : index
    %c0_8 = arith.constant 0 : index
    %c0_9 = arith.constant 0 : index
    %6 = vector.load %arg2[%c0_7, %c0_8, %c0_9] : memref<2x4x128xf32, #tpu.memory_space<vmem>>, vector<1x4x128xf32>
    %7 = vector.shape_cast %6 : vector<1x4x128xf32> to vector<4x128xf32>
    %c0_10 = arith.constant 0 : index
    %c0_11 = arith.constant 0 : index
    %c0_12 = arith.constant 0 : index
    %8 = vector.load %arg3[%c0_10, %c0_11, %c0_12] : memref<2x4x128xf32, #tpu.memory_space<vmem>>, vector<1x4x128xf32>
    %9 = vector.shape_cast %8 : vector<1x4x128xf32> to vector<4x128xf32>
    %10 = tpu.concatenate %7, %9 in 1 : vector<4x128xf32>, vector<4x128xf32> -> vector<4x256xf32>
    %11 = vector.extract_strided_slice %10 {offsets = [0, 0], sizes = [4, 128], strides = [1, 1]} : vector<4x256xf32> to vector<4x128xf32>
    %12 = vector.extract_strided_slice %3 {offsets = [0, 0, 0], sizes = [1, 32, 4], strides = [1, 1, 1]} : vector<9x32x4xf32> to vector<1x32x4xf32>
    %13 = vector.shape_cast %12 : vector<1x32x4xf32> to vector<32x4xf32>
    %cst = arith.constant dense<0.000000e+00> : vector<32x128xf32>
    %14 = tpu.matmul %13, %11, %cst {dimension_numbers = #tpu.dot_dimension_numbers<[1], [0], [0], [1], [0, 0, 1, 1], [], []>} : vector<32x4xf32>, vector<4x128xf32>, vector<32x128xf32> -> vector<32x128xf32>
    %15 = vector.extract_strided_slice %10 {offsets = [0, 1], sizes = [4, 128], strides = [1, 1]} : vector<4x256xf32> to vector<4x128xf32>
    %16 = vector.extract_strided_slice %3 {offsets = [1, 0, 0], sizes = [1, 32, 4], strides = [1, 1, 1]} : vector<9x32x4xf32> to vector<1x32x4xf32>
    %17 = vector.shape_cast %16 : vector<1x32x4xf32> to vector<32x4xf32>
    %cst_13 = arith.constant dense<0.000000e+00> : vector<32x128xf32>
    %18 = tpu.matmul %17, %15, %cst_13 {dimension_numbers = #tpu.dot_dimension_numbers<[1], [0], [0], [1], [0, 0, 1, 1], [], []>} : vector<32x4xf32>, vector<4x128xf32>, vector<32x128xf32> -> vector<32x128xf32>
    %19 = arith.addf %14, %18 : vector<32x128xf32>
    %20 = vector.extract_strided_slice %10 {offsets = [0, 2], sizes = [4, 128], strides = [1, 1]} : vector<4x256xf32> to vector<4x128xf32>
    %21 = vector.extract_strided_slice %3 {offsets = [2, 0, 0], sizes = [1, 32, 4], strides = [1, 1, 1]} : vector<9x32x4xf32> to vector<1x32x4xf32>
    %22 = vector.shape_cast %21 : vector<1x32x4xf32> to vector<32x4xf32>
    %cst_14 = arith.constant dense<0.000000e+00> : vector<32x128xf32>
    %23 = tpu.matmul %22, %20, %cst_14 {dimension_numbers = #tpu.dot_dimension_numbers<[1], [0], [0], [1], [0, 0, 1, 1], [], []>} : vector<32x4xf32>, vector<4x128xf32>, vector<32x128xf32> -> vector<32x128xf32>
    %24 = arith.addf %19, %23 : vector<32x128xf32>
    %25 = vector.extract_strided_slice %10 {offsets = [0, 18], sizes = [4, 128], strides = [1, 1]} : vector<4x256xf32> to vector<4x128xf32>
    %26 = vector.extract_strided_slice %3 {offsets = [3, 0, 0], sizes = [1, 32, 4], strides = [1, 1, 1]} : vector<9x32x4xf32> to vector<1x32x4xf32>
    %27 = vector.shape_cast %26 : vector<1x32x4xf32> to vector<32x4xf32>
    %cst_15 = arith.constant dense<0.000000e+00> : vector<32x128xf32>
    %28 = tpu.matmul %27, %25, %cst_15 {dimension_numbers = #tpu.dot_dimension_numbers<[1], [0], [0], [1], [0, 0, 1, 1], [], []>} : vector<32x4xf32>, vector<4x128xf32>, vector<32x128xf32> -> vector<32x128xf32>
    %29 = arith.addf %24, %28 : vector<32x128xf32>
    %30 = vector.extract_strided_slice %10 {offsets = [0, 19], sizes = [4, 128], strides = [1, 1]} : vector<4x256xf32> to vector<4x128xf32>
    %31 = vector.extract_strided_slice %3 {offsets = [4, 0, 0], sizes = [1, 32, 4], strides = [1, 1, 1]} : vector<9x32x4xf32> to vector<1x32x4xf32>
    %32 = vector.shape_cast %31 : vector<1x32x4xf32> to vector<32x4xf32>
    %cst_16 = arith.constant dense<0.000000e+00> : vector<32x128xf32>
    %33 = tpu.matmul %32, %30, %cst_16 {dimension_numbers = #tpu.dot_dimension_numbers<[1], [0], [0], [1], [0, 0, 1, 1], [], []>} : vector<32x4xf32>, vector<4x128xf32>, vector<32x128xf32> -> vector<32x128xf32>
    %34 = arith.addf %29, %33 : vector<32x128xf32>
    %35 = vector.extract_strided_slice %10 {offsets = [0, 20], sizes = [4, 128], strides = [1, 1]} : vector<4x256xf32> to vector<4x128xf32>
    %36 = vector.extract_strided_slice %3 {offsets = [5, 0, 0], sizes = [1, 32, 4], strides = [1, 1, 1]} : vector<9x32x4xf32> to vector<1x32x4xf32>
    %37 = vector.shape_cast %36 : vector<1x32x4xf32> to vector<32x4xf32>
    %cst_17 = arith.constant dense<0.000000e+00> : vector<32x128xf32>
    %38 = tpu.matmul %37, %35, %cst_17 {dimension_numbers = #tpu.dot_dimension_numbers<[1], [0], [0], [1], [0, 0, 1, 1], [], []>} : vector<32x4xf32>, vector<4x128xf32>, vector<32x128xf32> -> vector<32x128xf32>
    %39 = arith.addf %34, %38 : vector<32x128xf32>
    %40 = vector.extract_strided_slice %10 {offsets = [0, 36], sizes = [4, 128], strides = [1, 1]} : vector<4x256xf32> to vector<4x128xf32>
    %41 = vector.extract_strided_slice %3 {offsets = [6, 0, 0], sizes = [1, 32, 4], strides = [1, 1, 1]} : vector<9x32x4xf32> to vector<1x32x4xf32>
    %42 = vector.shape_cast %41 : vector<1x32x4xf32> to vector<32x4xf32>
    %cst_18 = arith.constant dense<0.000000e+00> : vector<32x128xf32>
    %43 = tpu.matmul %42, %40, %cst_18 {dimension_numbers = #tpu.dot_dimension_numbers<[1], [0], [0], [1], [0, 0, 1, 1], [], []>} : vector<32x4xf32>, vector<4x128xf32>, vector<32x128xf32> -> vector<32x128xf32>
    %44 = arith.addf %39, %43 : vector<32x128xf32>
    %45 = vector.extract_strided_slice %10 {offsets = [0, 37], sizes = [4, 128], strides = [1, 1]} : vector<4x256xf32> to vector<4x128xf32>
    %46 = vector.extract_strided_slice %3 {offsets = [7, 0, 0], sizes = [1, 32, 4], strides = [1, 1, 1]} : vector<9x32x4xf32> to vector<1x32x4xf32>
    %47 = vector.shape_cast %46 : vector<1x32x4xf32> to vector<32x4xf32>
    %cst_19 = arith.constant dense<0.000000e+00> : vector<32x128xf32>
    %48 = tpu.matmul %47, %45, %cst_19 {dimension_numbers = #tpu.dot_dimension_numbers<[1], [0], [0], [1], [0, 0, 1, 1], [], []>} : vector<32x4xf32>, vector<4x128xf32>, vector<32x128xf32> -> vector<32x128xf32>
    %49 = arith.addf %44, %48 : vector<32x128xf32>
    %50 = vector.extract_strided_slice %10 {offsets = [0, 38], sizes = [4, 128], strides = [1, 1]} : vector<4x256xf32> to vector<4x128xf32>
    %51 = vector.extract_strided_slice %3 {offsets = [8, 0, 0], sizes = [1, 32, 4], strides = [1, 1, 1]} : vector<9x32x4xf32> to vector<1x32x4xf32>
    %52 = vector.shape_cast %51 : vector<1x32x4xf32> to vector<32x4xf32>
    %cst_20 = arith.constant dense<0.000000e+00> : vector<32x128xf32>
    %53 = tpu.matmul %52, %50, %cst_20 {dimension_numbers = #tpu.dot_dimension_numbers<[1], [0], [0], [1], [0, 0, 1, 1], [], []>} : vector<32x4xf32>, vector<4x128xf32>, vector<32x128xf32> -> vector<32x128xf32>
    %54 = arith.addf %49, %53 : vector<32x128xf32>
    %55 = vector.broadcast %4 : vector<32x1xf32> to vector<32x128xf32>
    %56 = arith.addf %54, %55 : vector<32x128xf32>
    %cst_21 = arith.constant 0.000000e+00 : f32
    %57 = vector.broadcast %cst_21 : f32 to vector<32x128xf32>
    %58 = arith.maximumf %56, %57 : vector<32x128xf32>
    %59 = vector.broadcast %5 : vector<1x128xf32> to vector<32x128xf32>
    %60 = arith.mulf %58, %59 : vector<32x128xf32>
    %cst_22 = arith.constant dense<0.000000e+00> : vector<32xf32>
    %61 = vector.multi_reduction <add>, %60, %cst_22 [1] : vector<32x128xf32> to vector<32xf32>
    %62 = vector.shape_cast %61 : vector<32xf32> to vector<32x1xf32>
    %c1 = arith.constant 1 : index
    %c0_23 = arith.constant 0 : index
    %c0_24 = arith.constant 0 : index
    %63 = vector.load %arg2[%c1, %c0_23, %c0_24] : memref<2x4x128xf32, #tpu.memory_space<vmem>>, vector<1x4x128xf32>
    %64 = vector.shape_cast %63 : vector<1x4x128xf32> to vector<4x128xf32>
    %c1_25 = arith.constant 1 : index
    %c0_26 = arith.constant 0 : index
    %c0_27 = arith.constant 0 : index
    %65 = vector.load %arg3[%c1_25, %c0_26, %c0_27] : memref<2x4x128xf32, #tpu.memory_space<vmem>>, vector<1x4x128xf32>
    %66 = vector.shape_cast %65 : vector<1x4x128xf32> to vector<4x128xf32>
    %67 = tpu.concatenate %64, %66 in 1 : vector<4x128xf32>, vector<4x128xf32> -> vector<4x256xf32>
    %68 = vector.extract_strided_slice %67 {offsets = [0, 0], sizes = [4, 128], strides = [1, 1]} : vector<4x256xf32> to vector<4x128xf32>
    %69 = vector.extract_strided_slice %3 {offsets = [0, 0, 0], sizes = [1, 32, 4], strides = [1, 1, 1]} : vector<9x32x4xf32> to vector<1x32x4xf32>
    %70 = vector.shape_cast %69 : vector<1x32x4xf32> to vector<32x4xf32>
    %cst_28 = arith.constant dense<0.000000e+00> : vector<32x128xf32>
    %71 = tpu.matmul %70, %68, %cst_28 {dimension_numbers = #tpu.dot_dimension_numbers<[1], [0], [0], [1], [0, 0, 1, 1], [], []>} : vector<32x4xf32>, vector<4x128xf32>, vector<32x128xf32> -> vector<32x128xf32>
    %72 = vector.extract_strided_slice %67 {offsets = [0, 1], sizes = [4, 128], strides = [1, 1]} : vector<4x256xf32> to vector<4x128xf32>
    %73 = vector.extract_strided_slice %3 {offsets = [1, 0, 0], sizes = [1, 32, 4], strides = [1, 1, 1]} : vector<9x32x4xf32> to vector<1x32x4xf32>
    %74 = vector.shape_cast %73 : vector<1x32x4xf32> to vector<32x4xf32>
    %cst_29 = arith.constant dense<0.000000e+00> : vector<32x128xf32>
    %75 = tpu.matmul %74, %72, %cst_29 {dimension_numbers = #tpu.dot_dimension_numbers<[1], [0], [0], [1], [0, 0, 1, 1], [], []>} : vector<32x4xf32>, vector<4x128xf32>, vector<32x128xf32> -> vector<32x128xf32>
    %76 = arith.addf %71, %75 : vector<32x128xf32>
    %77 = vector.extract_strided_slice %67 {offsets = [0, 2], sizes = [4, 128], strides = [1, 1]} : vector<4x256xf32> to vector<4x128xf32>
    %78 = vector.extract_strided_slice %3 {offsets = [2, 0, 0], sizes = [1, 32, 4], strides = [1, 1, 1]} : vector<9x32x4xf32> to vector<1x32x4xf32>
    %79 = vector.shape_cast %78 : vector<1x32x4xf32> to vector<32x4xf32>
    %cst_30 = arith.constant dense<0.000000e+00> : vector<32x128xf32>
    %80 = tpu.matmul %79, %77, %cst_30 {dimension_numbers = #tpu.dot_dimension_numbers<[1], [0], [0], [1], [0, 0, 1, 1], [], []>} : vector<32x4xf32>, vector<4x128xf32>, vector<32x128xf32> -> vector<32x128xf32>
    %81 = arith.addf %76, %80 : vector<32x128xf32>
    %82 = vector.extract_strided_slice %67 {offsets = [0, 18], sizes = [4, 128], strides = [1, 1]} : vector<4x256xf32> to vector<4x128xf32>
    %83 = vector.extract_strided_slice %3 {offsets = [3, 0, 0], sizes = [1, 32, 4], strides = [1, 1, 1]} : vector<9x32x4xf32> to vector<1x32x4xf32>
    %84 = vector.shape_cast %83 : vector<1x32x4xf32> to vector<32x4xf32>
    %cst_31 = arith.constant dense<0.000000e+00> : vector<32x128xf32>
    %85 = tpu.matmul %84, %82, %cst_31 {dimension_numbers = #tpu.dot_dimension_numbers<[1], [0], [0], [1], [0, 0, 1, 1], [], []>} : vector<32x4xf32>, vector<4x128xf32>, vector<32x128xf32> -> vector<32x128xf32>
    %86 = arith.addf %81, %85 : vector<32x128xf32>
    %87 = vector.extract_strided_slice %67 {offsets = [0, 19], sizes = [4, 128], strides = [1, 1]} : vector<4x256xf32> to vector<4x128xf32>
    %88 = vector.extract_strided_slice %3 {offsets = [4, 0, 0], sizes = [1, 32, 4], strides = [1, 1, 1]} : vector<9x32x4xf32> to vector<1x32x4xf32>
    %89 = vector.shape_cast %88 : vector<1x32x4xf32> to vector<32x4xf32>
    %cst_32 = arith.constant dense<0.000000e+00> : vector<32x128xf32>
    %90 = tpu.matmul %89, %87, %cst_32 {dimension_numbers = #tpu.dot_dimension_numbers<[1], [0], [0], [1], [0, 0, 1, 1], [], []>} : vector<32x4xf32>, vector<4x128xf32>, vector<32x128xf32> -> vector<32x128xf32>
    %91 = arith.addf %86, %90 : vector<32x128xf32>
    %92 = vector.extract_strided_slice %67 {offsets = [0, 20], sizes = [4, 128], strides = [1, 1]} : vector<4x256xf32> to vector<4x128xf32>
    %93 = vector.extract_strided_slice %3 {offsets = [5, 0, 0], sizes = [1, 32, 4], strides = [1, 1, 1]} : vector<9x32x4xf32> to vector<1x32x4xf32>
    %94 = vector.shape_cast %93 : vector<1x32x4xf32> to vector<32x4xf32>
    %cst_33 = arith.constant dense<0.000000e+00> : vector<32x128xf32>
    %95 = tpu.matmul %94, %92, %cst_33 {dimension_numbers = #tpu.dot_dimension_numbers<[1], [0], [0], [1], [0, 0, 1, 1], [], []>} : vector<32x4xf32>, vector<4x128xf32>, vector<32x128xf32> -> vector<32x128xf32>
    %96 = arith.addf %91, %95 : vector<32x128xf32>
    %97 = vector.extract_strided_slice %67 {offsets = [0, 36], sizes = [4, 128], strides = [1, 1]} : vector<4x256xf32> to vector<4x128xf32>
    %98 = vector.extract_strided_slice %3 {offsets = [6, 0, 0], sizes = [1, 32, 4], strides = [1, 1, 1]} : vector<9x32x4xf32> to vector<1x32x4xf32>
    %99 = vector.shape_cast %98 : vector<1x32x4xf32> to vector<32x4xf32>
    %cst_34 = arith.constant dense<0.000000e+00> : vector<32x128xf32>
    %100 = tpu.matmul %99, %97, %cst_34 {dimension_numbers = #tpu.dot_dimension_numbers<[1], [0], [0], [1], [0, 0, 1, 1], [], []>} : vector<32x4xf32>, vector<4x128xf32>, vector<32x128xf32> -> vector<32x128xf32>
    %101 = arith.addf %96, %100 : vector<32x128xf32>
    %102 = vector.extract_strided_slice %67 {offsets = [0, 37], sizes = [4, 128], strides = [1, 1]} : vector<4x256xf32> to vector<4x128xf32>
    %103 = vector.extract_strided_slice %3 {offsets = [7, 0, 0], sizes = [1, 32, 4], strides = [1, 1, 1]} : vector<9x32x4xf32> to vector<1x32x4xf32>
    %104 = vector.shape_cast %103 : vector<1x32x4xf32> to vector<32x4xf32>
    %cst_35 = arith.constant dense<0.000000e+00> : vector<32x128xf32>
    %105 = tpu.matmul %104, %102, %cst_35 {dimension_numbers = #tpu.dot_dimension_numbers<[1], [0], [0], [1], [0, 0, 1, 1], [], []>} : vector<32x4xf32>, vector<4x128xf32>, vector<32x128xf32> -> vector<32x128xf32>
    %106 = arith.addf %101, %105 : vector<32x128xf32>
    %107 = vector.extract_strided_slice %67 {offsets = [0, 38], sizes = [4, 128], strides = [1, 1]} : vector<4x256xf32> to vector<4x128xf32>
    %108 = vector.extract_strided_slice %3 {offsets = [8, 0, 0], sizes = [1, 32, 4], strides = [1, 1, 1]} : vector<9x32x4xf32> to vector<1x32x4xf32>
    %109 = vector.shape_cast %108 : vector<1x32x4xf32> to vector<32x4xf32>
    %cst_36 = arith.constant dense<0.000000e+00> : vector<32x128xf32>
    %110 = tpu.matmul %109, %107, %cst_36 {dimension_numbers = #tpu.dot_dimension_numbers<[1], [0], [0], [1], [0, 0, 1, 1], [], []>} : vector<32x4xf32>, vector<4x128xf32>, vector<32x128xf32> -> vector<32x128xf32>
    %111 = arith.addf %106, %110 : vector<32x128xf32>
    %112 = vector.broadcast %4 : vector<32x1xf32> to vector<32x128xf32>
    %113 = arith.addf %111, %112 : vector<32x128xf32>
    %cst_37 = arith.constant 0.000000e+00 : f32
    %114 = vector.broadcast %cst_37 : f32 to vector<32x128xf32>
    %115 = arith.maximumf %113, %114 : vector<32x128xf32>
    %116 = vector.broadcast %5 : vector<1x128xf32> to vector<32x128xf32>
    %117 = arith.mulf %115, %116 : vector<32x128xf32>
    %cst_38 = arith.constant dense<0.000000e+00> : vector<32xf32>
    %118 = vector.multi_reduction <add>, %117, %cst_38 [1] : vector<32x128xf32> to vector<32xf32>
    %119 = vector.shape_cast %118 : vector<32xf32> to vector<32x1xf32>
    %c0_39 = arith.constant 0 : index
    %c0_40 = arith.constant 0 : index
    %c0_41 = arith.constant 0 : index
    %120 = vector.load %arg7[%c0_39, %c0_40, %c0_41] : memref<1x32x2xf32, #tpu.memory_space<vmem>>, vector<1x32x2xf32>
    %121 = tpu.concatenate %62, %119 in 1 : vector<32x1xf32>, vector<32x1xf32> -> vector<32x2xf32>
    %122 = vector.shape_cast %121 : vector<32x2xf32> to vector<1x32x2xf32>
    %123 = arith.addf %120, %122 : vector<1x32x2xf32>
    %c0_42 = arith.constant 0 : index
    %c0_43 = arith.constant 0 : index
    %c0_44 = arith.constant 0 : index
    %124 = vector.load %arg7[%c0_42, %c0_43, %c0_44] : memref<1x32x2xf32, #tpu.memory_space<vmem>>, vector<1x32x2xf32>
    tpu.vector_store %arg7[%c0_42, %c0_43, %c0_44], %123 {strides = array<i32>} : memref<1x32x2xf32, #tpu.memory_space<vmem>>, vector<1x32x2xf32>,
    return
  }
  func.func @transform_0(%arg0: i32, %arg1: i32) -> (i32, i32, i32) {
    %c0_i32 = arith.constant 0 : i32
    %c0_i32_0 = arith.constant 0 : i32
    return %arg0, %c0_i32, %arg1 : i32, i32, i32
  }
  func.func @transform_1(%arg0: i32, %arg1: i32) -> (i32, i32, i32) {
    %c1_i32 = arith.constant 1 : i32
    %0 = arith.addi %arg1, %c1_i32 : i32
    %c1_i32_0 = arith.constant 1 : i32
    %1 = arith.muli %0, %c1_i32_0 : i32
    %c0_i32 = arith.constant 0 : i32
    %c0_i32_1 = arith.constant 0 : i32
    return %arg0, %c0_i32, %1 : i32, i32, i32
  }
  func.func @transform_2(%arg0: i32, %arg1: i32) -> (i32, i32, i32) {
    %c0_i32 = arith.constant 0 : i32
    %c0_i32_0 = arith.constant 0 : i32
    %c0_i32_1 = arith.constant 0 : i32
    %c0_i32_2 = arith.constant 0 : i32
    return %c0_i32, %c0_i32_0, %c0_i32_1 : i32, i32, i32
  }
  func.func @transform_3(%arg0: i32, %arg1: i32) -> (i32, i32) {
    %c0_i32 = arith.constant 0 : i32
    %c0_i32_0 = arith.constant 0 : i32
    %c0_i32_1 = arith.constant 0 : i32
    return %c0_i32, %c0_i32_0 : i32, i32
  }
  func.func @transform_4(%arg0: i32, %arg1: i32) -> (i32, i32) {
    %c0_i32 = arith.constant 0 : i32
    %c0_i32_0 = arith.constant 0 : i32
    return %c0_i32, %arg1 : i32, i32
  }
  func.func @transform_5(%arg0: i32, %arg1: i32) -> (i32, i32, i32) {
    %c0_i32 = arith.constant 0 : i32
    %c0_i32_0 = arith.constant 0 : i32
    %c0_i32_1 = arith.constant 0 : i32
    return %arg0, %c0_i32, %c0_i32_0 : i32, i32, i32
  }
}

</mosaic_0001>

<bundles_post_ra>
// kernel: oct_cross_view_forward.1
= control target key start
LH: loop header
LB: loop body
LE: loop exit
PB: predicated region body
PF: predicated region fallthrough
CT: control target
= control target key end

     0   :  { %s3055_s18 = smov 0   ;;  %s3057_s19 = smov 0   ;;  %s3492_s0 = inlined_call_operand.vmem [shape: f32[4,4,512], index: 0, kind: input, shape index: {}, may-alias: {0,1}]   ;;  %s3493_s1 = inlined_call_operand.vmem [shape: f32[4,4,512], index: 1, kind: input, shape index: {}, may-alias: {0,1}]   ;;  %s3494_s2 = inlined_call_operand.vmem [shape: f32[9,32,4], index: 2, kind: input, shape index: {}]   ;;  %s3495_s3 = inlined_call_operand.vmem [shape: f32[32,1], index: 3, kind: input, shape index: {}]   ;;  %s3496_s4 = inlined_call_operand.vmem [shape: f32[1,384], index: 4, kind: input, shape index: {}]   ;;  %s3497_s5 = inlined_call_operand.vmem [shape: f32[2,32,2], index: 5, kind: output, shape index: {}]  }
   0x1   :  { %s3059_s20 = smov 0   ;;  %s3061_s21 = smov 0  }
   0x2   :  { %s3063_s22 = smov 0   ;;  %s3065_s23 = smov 0  }
   0x3   :  { %s3067_s24 = smov 0   ;;  %s3069_s25 = smov 0  }
   0x4   :  { %s3071_s26 = smov 0  }
   0x5 LB: > { %s24_s27 = sadd.s32 1, %s3005_s24  ;;  %s27_s28 = sadd.s32 1, %s3009_s25  ;;  %s3013_s26 = sphi %s3071_s26, %s15_s26   ;;  %s3009_s25 = sphi %s3069_s25, %s3510_s25   ;;  %s3005_s24 = sphi %s3067_s24, %s3509_s24   ;;  %s3001_s23 = sphi %s3065_s23, %s3508_s23   ;;  %s2997_s22 = sphi %s3063_s22, %s3507_s22   ;;  %s2993_s21 = sphi %s3061_s21, %s3506_s21   ;;  %s2989_s20 = sphi %s3059_s20, %s3505_s20   ;;  %s2985_s19 = sphi %s3057_s19, %s3504_s19   ;;  %s2981_s18 = sphi %s3055_s18, %s3503_s18  }
   0x6   : > { %p25_p0 = scmp.ge.s32.totalorder %s24_s27, 3  ;;  %p43_p1 = scmp.ne.s32.totalorder %s2993_s21, %s2989_s20 }
   0x7   : > { %p44_p2 = scmp.eq.s32.totalorder %s3013_s26, 0  ;;  %s36_s9 = sadd.s32 1, %s2993_s21 }
   0x8   : > { %s3105_s29 = scalar_select %p25_p0, 0, %s24_s27  }
   0x9   : > { %s3512_s28 = smov (!%p25_p0, %s27_s28), %s3009_s25  ;;  %p3110_p3 = por %p44_p2, %p43_p1 }
   0xa   : > { %p29_p4 = scmp.ge.s32.totalorder %s3512_s28, 2  ;;  %s60_s6 = sadd.s32 1, %s3105_s29 }
   0xb   : > { %s32_s7 = ssub.s32 %s3005_s24, %s3105_s29  ;;  %s62_s8 = ssub.s32 %s24_s27, %s60_s6 }
   0xc   : > { %s3514_s28 = smov (%p29_p4, %s3512_s28), 0  ;;  %p73_p5 = scmp.ne.s32.totalorder %s2985_s19, %s2981_s18 }
   0xd   : > { %3500 = sst [smem:[#allocation4_spill]] %s3514_s28  ;;  %s31_s10 = ssub.s32 %s3009_s25, %s3514_s28 }
   0xe   : > { %s66_s11 = sadd.s32 1, %s2985_s19  ;;  %s33_s12 = sor.u32 %s32_s7, %s31_s10 }
   0xf   : > { %s63_s13 = sor.u32 %s62_s8, %s31_s10  ;;  %p34_p6 = scmp.eq.s32.totalorder %s33_s12, 0 }
  0x10   : > { %p64_p7 = scmp.eq.s32.totalorder %s63_s13, 0  ;;  %p3127_p8 = por %p73_p5, %p44_p2 }
  0x11   : > { %s3132_s15 = scalar_select %p34_p6, %s2993_s21, %s36_s9  }
  0x12   : > { %s3135_s16 = scalar_select %p64_p7, %s2985_s19, %s66_s11  }
  0x13   : > { %p2448_p9 = scmp.ge.s32.totalorder %s3013_s26, 6 }
  0x15   : > { %199 = sbr.rel (%p2448_p9) target bundleno = 42 (0x2a), region = 24 }
  0x1c   : > { %202 = sbr.rel (!%p3110_p3) target bundleno = 35 (0x23), region = 28  ;;  %s204_s17 = sand.u32 (%p3110_p3), 1, %s2993_s21  }
  0x1d   : > { %s2559_s27 = sshll.u32 (%p3110_p3), %s3009_s25, 3  ;;  %s2449_s6 = sshll.u32 (%p3110_p3), %s204_s17, 3 }
  0x1e   : > { %s209_s7 = sadd.s32 (%p3110_p3), %s3005_s24, %s2559_s27  ;;  %s206_s11 = scalar_lea.vmem (%p3110_p3), [#allocation2], %s2449_s6 }
  0x1f   : > { %s2452_s8 = sshll.u32 (%p3110_p3), %s209_s7, 2 }
  0x20   : > { %s211_s9 = scalar_lea.vmem (%p3110_p3), %s3492_s0, %s2452_s8 }
  0x21   : > { %v227_v0 = vld [vmem:[%s211_s9] sm:$0xf] (%p3110_p3)  ;;  %v229_v1 = vld [vmem:[%s211_s9 + $0x10] sm:$0xf] (%p3110_p3) }
  0x22   : > { %228 = vst [vmem:[%s206_s11] sm:$0xf] (%p3110_p3), %v227_v0  ;;  %230 = vst [vmem:[%s206_s11 + $0x4] sm:$0xf] (%p3110_p3), %v229_v1 }
  0x23 PF: > { %257 = sbr.rel (!%p3127_p8) target bundleno = 42 (0x2a), region = 69  ;;  %s259_s30 = sand.u32 (%p3127_p8), 1, %s2985_s19  }
  0x24   : > { %s2454_s13 = sshll.u32 (%p3127_p8), %s3009_s25, 3  ;;  %s2453_s17 = sshll.u32 (%p3127_p8), %s259_s30, 3 }
  0x25   : > { %s2371_s27 = sadd.s32 (%p3127_p8), %s3005_s24, %s2454_s13  ;;  %s261_s6 = scalar_lea.vmem (%p3127_p8), [#allocation3], %s2453_s17 }
  0x26   : > { %s2455_s7 = sshll.u32 (%p3127_p8), %s2371_s27, 2 }
  0x27   : > { %s2373_s8 = scalar_lea.vmem (%p3127_p8), %s3493_s1, %s2455_s7 }
  0x28   : > { %v2456_v2 = vld [vmem:[%s2373_s8 + $0x4] sm:$0xf] (%p3127_p8)  ;;  %v2457_v3 = vld [vmem:[%s2373_s8 + $0x14] sm:$0xf] (%p3127_p8) }
  0x29   : > { %284 = vst [vmem:[%s261_s6] sm:$0xf] (%p3127_p8), %v2456_v2  ;;  %286 = vst [vmem:[%s261_s6 + $0x4] sm:$0xf] (%p3127_p8), %v2457_v3 }
  0x2a PF: > { %p2458_p10 = scmp.ge.s32.totalorder %s3013_s26, 1  ;;  %p318_p11 = scmp.lt.s32.totalorder %s3013_s26, 7 }
  0x2c   : > { %p319_p12 = pnand %p2458_p10, %p318_p11 }
  0x2d   : > { %s325_s28 = sand.u32 (!%p319_p12), 1, %s2989_s20   ;;  %s332_s14 = sand.u32 (!%p319_p12), 1, %s2981_s18  }
  0x2e   : > { %322 = sbr.rel (%p319_p12) target bundleno = 625 (0x271), region = 114  ;;  %s2459_s12 = sshll.u32 (!%p319_p12), %s325_s28, 3 }
  0x2f   : > { %s2460_s9 = sshll.u32 (!%p319_p12), %s332_s14, 3  ;;  %p369_p13 = scmp.lt.s32.totalorder (!%p319_p12), %s2997_s22, 2 }
  0x30   : > { %p372_p0 = scmp.lt.s32.totalorder (!%p319_p12), %s3001_s23, 1  ;;  %s327_s20 = scalar_lea.vmem (!%p319_p12), [#allocation2], %s2459_s12 }
  0x31   : > { %s334_s18 = scalar_lea.vmem (!%p319_p12), [#allocation3], %s2460_s9  ;;  %p2463_p1 = scmp.ne.s32.totalorder (!%p319_p12), %s2997_s22, 0 }
  0x35   : > { %s3161_s11 = scalar_select %p369_p13, %s2997_s22, 2 }
  0x36   : > { %s3516_s23 = smov (!%p372_p0, %s3001_s23), 1  ;;  %380 = sbr.rel (%p2463_p1) target bundleno = 61 (0x3d), region = 126 }
  0x37   : > { %s371_s17 = scalar_lea.vmem %s3496_s4, %s3161_s11  ;;  %s2560_s27 = sshll.u32 %s3516_s23, 5  ;;  %vm381_vm0 = vcmask (!%p2463_p1), 15360   ;;  %v3015_v4 = vmov (!%p2463_p1), 0.0  }
  0x38   : > { %s3171_s8 = scalar_lea.vmem %s3497_s5, %s2560_s27 }
  0x39   : > { %382 = vst.msk [vmem:[%s3171_s8] sm:$0xff] (!%p2463_p1), %vm381_vm0, %v3015_v4  ;;  %383 = vst.msk [vmem:[%s3171_s8 + $0x8] sm:$0xff] (!%p2463_p1), %vm381_vm0, %v3015_v4 }
  0x3a   : > { %384 = vst.msk [vmem:[%s3171_s8 + $0x10] sm:$0xff] (!%p2463_p1), %vm381_vm0, %v3015_v4  ;;  %385 = vst.msk [vmem:[%s3171_s8 + $0x18] sm:$0xff] (!%p2463_p1), %vm381_vm0, %v3015_v4 }
  0x3d PF: > { %v3178_v5 = vld [vmem:[%s327_s20 + $0x4] sm:$0xf]  ;;  %v3180_v6 = vld [vmem:[%s327_s20] sm:$0xf]  ;;  %s3016_s23 = smov 127   ;;  %vm437_vm1 = vcmask 31744  }
  0x3e   : > { %1452 = vrot.lane.b32.xlu1 %v3178_v5, %s3016_s23  ;;  %431 = vrot.lane.b32.xlu0 %v3180_v6, %s3016_s23  ;;  %v2511_v7 = vld [vmem:[%s334_s18 + $0x4] sm:$0xf]  ;;  %v428_v8 = vld [vmem:[%s334_s18] sm:$0xf]  ;;  %s3017_s28 = smov 126   ;;  %s3018_s14 = smov 110  }
  0x3f   : > { %v390_v9 = vld [vmem:[%s3494_s2 + $0x20] sm:$0xff]  ;;  %s3019_s12 = smov 109   ;;  %s3020_s9 = smov 108   ;;  %v423_v10 = vld [vmem:[%s3495_s3 + $0x8] sm:$0xff]  ;;  %v3024_v12 = vmov 0   ;;  %v424_v13 = vld [vmem:[%s3495_s3 + $0x10] sm:$0xff] }
  0x40   : > { %2653 = vmatprep.mubr.msk.f32.mxu0 %vm437_vm1, %v390_v9  ;;  %2725 = vmatprep.mubr.msk.f32.mxu1 %vm437_vm1, %v390_v9  ;;  %s3021_s30 = smov 92   ;;  %s3022_s13 = smov 91   ;;  %v422_v11 = vld [vmem:[%s3495_s3] sm:$0xff]  ;;  %v425_v14 = vld [vmem:[%s3495_s3 + $0x18] sm:$0xff]  ;;  %vm435_vm2 = vcmask 1039360   ;;  %vm450_vm3 = vcmask 1043456  }
  0x41   : > { %s3023_s27 = smov 90   ;;  %2942 = vset.pattern.permute.xlu1 %v3024_v12  ;;  %2941 = vset.pattern.permute.xlu0 %v3024_v12  ;;  %v391_v21 = vld [vmem:[%s3494_s2 + $0x28] sm:$0xff]  ;;  %vm641_vm4 = vcmask 1031168   ;;  %v392_v24 = vld [vmem:[%s3494_s2 + $0x30] sm:$0xff]  ;;  %v393_v26 = vld [vmem:[%s3494_s2 + $0x38] sm:$0xff]  ;;  %vm750_vm5 = vcmask 900096  }
  0x42   : > { %1454 = vrot.lane.b32.xlu1 %v2511_v7, %s3016_s23  ;;  %433 = vrot.lane.b32.xlu0 %v428_v8, %s3016_s23  ;;  %v386_v27 = vld [vmem:[%s3494_s2] sm:$0xff]  ;;  %v387_v31 = vld [vmem:[%s3494_s2 + $0x8] sm:$0xff]  ;;  %vm859_vm6 = vcmask 891904   ;;  %vm968_vm7 = vcmask 883712   ;;  %vm1077_vm8 = vcmask 752640   ;;  %vm1186_vm9 = vcmask 744448  }
  0x43   : > { %v388_v32 = vld [vmem:[%s3494_s2 + $0x10] sm:$0xff]  ;;  %v389_v36 = vld [vmem:[%s3494_s2 + $0x18] sm:$0xff]  ;;  %v394_v37 = vld [vmem:[%s3494_s2 + $0x40] sm:$0xff]  ;;  %vm1295_vm10 = vcmask 736256   ;;  %vm2327_vm11 = vcmask 7168   ;;  %vm2336_vm12 = vcmask 15360  }
  0x44   : > { %v395_v41 = vld [vmem:[%s3494_s2 + $0x48] sm:$0xff]  ;;  %v396_v42 = vld [vmem:[%s3494_s2 + $0x50] sm:$0xff]  ;;  %v397_v46 = vld [vmem:[%s3494_s2 + $0x58] sm:$0xff] }
  0x45   : > { %v398_v47 = vld [vmem:[%s3494_s2 + $0x60] sm:$0xff]  ;;  %v399_v51 = vld [vmem:[%s3494_s2 + $0x68] sm:$0xff]  ;;  %v400_v52 = vld [vmem:[%s3494_s2 + $0x70] sm:$0xff] }
  0x46   : > { %639 = vrot.lane.b32.xlu1 %v428_v8, %s3017_s28  ;;  %637 = vrot.lane.b32.xlu0 %v3180_v6, %s3017_s28  ;;  %v401_v56 = vld [vmem:[%s3494_s2 + $0x78] sm:$0xff]  ;;  %v402_v57 = vld [vmem:[%s3494_s2 + $0x80] sm:$0xff] }
  0x47   : > { %v403_v61 = vld [vmem:[%s3494_s2 + $0x88] sm:$0xff]  ;;  %v404_v62 = vld [vmem:[%s3494_s2 + $0x90] sm:$0xff]  ;;  %v405_v2 = vld [vmem:[%s3494_s2 + $0x98] sm:$0xff] }
  0x48   : > { %v406_v3 = vld [vmem:[%s3494_s2 + $0xa0] sm:$0xff]  ;;  %v409_v12 = vld [vmem:[%s3494_s2 + $0xb8] sm:$0xff] }
  0x4a   : > { %1633 = vrot.lane.b32.xlu1 %v2511_v7, %s3017_s28  ;;  %1631 = vrot.lane.b32.xlu0 %v3178_v5, %s3017_s28 }
  0x4e   : > { %748 = vrot.lane.b32.xlu1 %v428_v8, %s3018_s14  ;;  %746 = vrot.lane.b32.xlu0 %v3180_v6, %s3018_s14 }
  0x52   : > { %1729 = vrot.lane.b32.xlu1 %v2511_v7, %s3018_s14  ;;  %1727 = vrot.lane.b32.xlu0 %v3178_v5, %s3018_s14 }
  0x56   : > { %857 = vrot.lane.b32.xlu1 %v428_v8, %s3019_s12  ;;  %855 = vrot.lane.b32.xlu0 %v3180_v6, %s3019_s12 }
  0x5a   : > { %1825 = vrot.lane.b32.xlu1 %v2511_v7, %s3019_s12  ;;  %1823 = vrot.lane.b32.xlu0 %v3178_v5, %s3019_s12 }
  0x5e   : > { %966 = vrot.lane.b32.xlu1 %v428_v8, %s3020_s9  ;;  %964 = vrot.lane.b32.xlu0 %v3180_v6, %s3020_s9 }
  0x62   : > { %1921 = vrot.lane.b32.xlu1 %v2511_v7, %s3020_s9  ;;  %1919 = vrot.lane.b32.xlu0 %v3178_v5, %s3020_s9 }
  0x66   : > { %1075 = vrot.lane.b32.xlu1 %v428_v8, %s3021_s30  ;;  %1073 = vrot.lane.b32.xlu0 %v3180_v6, %s3021_s30 }
  0x6a   : > { %2017 = vrot.lane.b32.xlu1 %v2511_v7, %s3021_s30  ;;  %2015 = vrot.lane.b32.xlu0 %v3178_v5, %s3021_s30 }
  0x6e   : > { %1184 = vrot.lane.b32.xlu1 %v428_v8, %s3022_s13  ;;  %1182 = vrot.lane.b32.xlu0 %v3180_v6, %s3022_s13 }
  0x72   : > { %2113 = vrot.lane.b32.xlu1 %v2511_v7, %s3022_s13  ;;  %2111 = vrot.lane.b32.xlu0 %v3178_v5, %s3022_s13 }
  0x76   : > { %1293 = vrot.lane.b32.xlu1 %v428_v8, %s3023_s27  ;;  %1291 = vrot.lane.b32.xlu0 %v3180_v6, %s3023_s27  ;;  %v408_v8 = vld [vmem:[%s3494_s2 + $0xb0] sm:$0xff] }
  0x7a   : > { %2209 = vrot.lane.b32.xlu1 %v2511_v7, %s3023_s27  ;;  %2207 = vrot.lane.b32.xlu0 %v3178_v5, %s3023_s27  ;;  %v407_v7 = vld [vmem:[%s3494_s2 + $0xa8] sm:$0xff] }
  0x7e   : > { %1407 = vperm.xlu1 %2942, %v423_v10   ;;  %1402 = vperm.xlu0 %2941, %v422_v11  }
  0x82   : > { %1412 = vperm.xlu1 %2942, %v424_v13   ;;  %1417 = vperm.xlu0 %2941, %v425_v14   ;;  %v410_v13 = vld [vmem:[%s3494_s2 + $0xc0] sm:$0xff] }
  0xb0   : > { %v1453_v15 = vpop.permute.xlu1 %1452  ;;  %v432_v16 = vpop.permute.xlu0 %431 }
  0xb4   : > { %v1455_v17 = vpop.permute.xlu1 %1454  ;;  %v434_v18 = vpop.permute.xlu0 %433 }
  0xb5   : > { %v436_v19 = vsel %vm435_vm2, %v432_v16, %v434_v18  ;;  %v1456_v20 = vsel %vm435_vm2, %v1453_v15, %v1455_v17  ;;  %v411_v17 = vld [vmem:[%s3494_s2 + $0xc8] sm:$0xff]  ;;  %v412_v18 = vld [vmem:[%s3494_s2 + $0xd0] sm:$0xff] }
  0xb6   : > { %2651 = vmatprep.subr.msk.mxu0 %vm450_vm3, %v436_v19  ;;  %2723 = vmatprep.subr.msk.mxu1 %vm450_vm3, %v1456_v20 }
  0xb7   : > { %2652 = vmatpush3.msk.msra.mxu0 %vm450_vm3, %v436_v19  ;;  %2724 = vmatpush3.msk.msra.mxu1 %vm450_vm3, %v1456_v20 }
  0xb8   : > { %2654 = vmatmul.mubr.msk.f32.vlgmr.msra.gmra.mrb[0].mxu0 %vm437_vm1, %v391_v21  ;;  %2659 = vmatprep.subr.msk.mxu0 %vm450_vm3, %v3180_v6  ;;  %v640_v22 = vpop.permute.xlu1 %639  ;;  %v638_v23 = vpop.permute.xlu0 %637 }
  0xb9   : > { %2726 = vmatmul.mubr.msk.f32.vlgmr.msra.gmra.mrb[0].mxu1 %vm437_vm1, %v391_v21  ;;  %2731 = vmatprep.subr.msk.mxu1 %vm450_vm3, %v3178_v5  ;;  %v642_v25 = vsel %vm641_vm4, %v638_v23, %v640_v22  ;;  %v413_v22 = vld [vmem:[%s3494_s2 + $0xd8] sm:$0xff]  ;;  %v414_v23 = vld [vmem:[%s3494_s2 + $0xe0] sm:$0xff] }
  0xba   : > { %2660 = vmatpush3.msk.msra.mxu0 %vm450_vm3, %v3180_v6  ;;  %2732 = vmatpush3.msk.msra.mxu1 %vm450_vm3, %v3178_v5 }
  0xbb   : > { %2656 = vmatprep.mubr.msk.f32.mxu0 %vm437_vm1, %v392_v24  ;;  %2728 = vmatprep.mubr.msk.f32.mxu1 %vm437_vm1, %v392_v24 }
  0xbc   : > { %2657 = vmatmul.mubr.msk.f32.gmra.mrb[2].mxu0 %vm437_vm1, %v393_v26  ;;  %2667 = vmatprep.subr.msk.mxu0 %vm450_vm3, %v642_v25  ;;  %v1634_v28 = vpop.permute.xlu1 %1633  ;;  %v1632_v29 = vpop.permute.xlu0 %1631 }
  0xbd   : > { %2729 = vmatmul.mubr.msk.f32.gmra.mrb[2].mxu1 %vm437_vm1, %v393_v26  ;;  %v1635_v30 = vsel %vm641_vm4, %v1632_v29, %v1634_v28  ;;  %2661 = vmatprep.mubr.msk.f32.mxu0 %vm437_vm1, %v386_v27  ;;  %v416_v28 = vld [vmem:[%s3494_s2 + $0xf0] sm:$0xff]  ;;  %v417_v29 = vld [vmem:[%s3494_s2 + $0xf8] sm:$0xff] }
  0xbe   : > { %2733 = vmatprep.mubr.msk.f32.mxu1 %vm437_vm1, %v386_v27  ;;  %2739 = vmatprep.subr.msk.mxu1 %vm450_vm3, %v1635_v30  ;;  %v415_v27 = vld [vmem:[%s3494_s2 + $0xe8] sm:$0xff] }
  0xc0   : > { %2662 = vmatmul.mubr.msk.f32.vlgmr.msra.gmra.mrb[0].mxu0 %vm437_vm1, %v387_v31  ;;  %v749_v33 = vpop.permute.xlu1 %748  ;;  %v747_v34 = vpop.permute.xlu0 %746 }
  0xc1   : > { %2668 = vmatpush3.msk.msra.mxu0 %vm450_vm3, %v642_v25  ;;  %2734 = vmatmul.mubr.msk.f32.vlgmr.msra.gmra.mrb[0].mxu1 %vm437_vm1, %v387_v31  ;;  %v751_v35 = vsel %vm750_vm5, %v747_v34, %v749_v33  ;;  %v419_v31 = vld [vmem:[%s3494_s2 + $0x108] sm:$0xff]  ;;  %v421_v33 = vld [vmem:[%s3494_s2 + $0x118] sm:$0xff] }
  0xc2   : > { %2740 = vmatpush3.msk.msra.mxu1 %vm450_vm3, %v1635_v30  ;;  %2664 = vmatprep.mubr.msk.f32.mxu0 %vm437_vm1, %v388_v32  ;;  %v418_v30 = vld [vmem:[%s3494_s2 + $0x100] sm:$0xff] }
  0xc3   : > { %2736 = vmatprep.mubr.msk.f32.mxu1 %vm437_vm1, %v388_v32  ;;  %2675 = vmatprep.subr.msk.mxu0 %vm450_vm3, %v751_v35  ;;  %v420_v32 = vld [vmem:[%s3494_s2 + $0x110] sm:$0xff] }
  0xc4   : > { %2665 = vmatmul.mubr.msk.f32.gmra.mrb[2].mxu0 %vm437_vm1, %v389_v36  ;;  %v1730_v38 = vpop.permute.xlu1 %1729  ;;  %v1728_v39 = vpop.permute.xlu0 %1727 }
  0xc5   : > { %2737 = vmatmul.mubr.msk.f32.gmra.mrb[2].mxu1 %vm437_vm1, %v389_v36  ;;  %v1731_v40 = vsel %vm750_vm5, %v1728_v39, %v1730_v38  ;;  %2669 = vmatprep.mubr.msk.f32.mxu0 %vm437_vm1, %v394_v37 }
  0xc6   : > { %2741 = vmatprep.mubr.msk.f32.mxu1 %vm437_vm1, %v394_v37  ;;  %2747 = vmatprep.subr.msk.mxu1 %vm450_vm3, %v1731_v40 }
  0xc8   : > { %2670 = vmatmul.mubr.msk.f32.vlgmr.msra.gmra.mrb[0].mxu0 %vm437_vm1, %v395_v41  ;;  %v858_v43 = vpop.permute.xlu1 %857  ;;  %v856_v44 = vpop.permute.xlu0 %855 }
  0xc9   : > { %2676 = vmatpush3.msk.msra.mxu0 %vm450_vm3, %v751_v35  ;;  %2742 = vmatmul.mubr.msk.f32.vlgmr.msra.gmra.mrb[0].mxu1 %vm437_vm1, %v395_v41  ;;  %v860_v45 = vsel %vm859_vm6, %v856_v44, %v858_v43  ;;  %v2509_v43 = vld [vmem:[%s371_s17] ss:$0 sm:$0xff] }
  0xca   : > { %2748 = vmatpush3.msk.msra.mxu1 %vm450_vm3, %v1731_v40  ;;  %2672 = vmatprep.mubr.msk.f32.mxu0 %vm437_vm1, %v396_v42 }
  0xcb   : > { %2744 = vmatprep.mubr.msk.f32.mxu1 %vm437_vm1, %v396_v42  ;;  %2683 = vmatprep.subr.msk.mxu0 %vm450_vm3, %v860_v45 }
  0xcc   : > { %2673 = vmatmul.mubr.msk.f32.gmra.mrb[2].mxu0 %vm437_vm1, %v397_v46  ;;  %v1826_v48 = vpop.permute.xlu1 %1825  ;;  %v1824_v49 = vpop.permute.xlu0 %1823 }
  0xcd   : > { %2745 = vmatmul.mubr.msk.f32.gmra.mrb[2].mxu1 %vm437_vm1, %v397_v46  ;;  %v1827_v50 = vsel %vm859_vm6, %v1824_v49, %v1826_v48  ;;  %2677 = vmatprep.mubr.msk.f32.mxu0 %vm437_vm1, %v398_v47 }
  0xce   : > { %2749 = vmatprep.mubr.msk.f32.mxu1 %vm437_vm1, %v398_v47  ;;  %2755 = vmatprep.subr.msk.mxu1 %vm450_vm3, %v1827_v50 }
  0xd0   : > { %2678 = vmatmul.mubr.msk.f32.vlgmr.msra.gmra.mrb[0].mxu0 %vm437_vm1, %v399_v51  ;;  %v967_v53 = vpop.permute.xlu1 %966  ;;  %v965_v54 = vpop.permute.xlu0 %964 }
  0xd1   : > { %2684 = vmatpush3.msk.msra.mxu0 %vm450_vm3, %v860_v45  ;;  %2750 = vmatmul.mubr.msk.f32.vlgmr.msra.gmra.mrb[0].mxu1 %vm437_vm1, %v399_v51  ;;  %v969_v55 = vsel %vm968_vm7, %v965_v54, %v967_v53 }
  0xd2   : > { %2756 = vmatpush3.msk.msra.mxu1 %vm450_vm3, %v1827_v50  ;;  %2680 = vmatprep.mubr.msk.f32.mxu0 %vm437_vm1, %v400_v52 }
  0xd3   : > { %2752 = vmatprep.mubr.msk.f32.mxu1 %vm437_vm1, %v400_v52  ;;  %2691 = vmatprep.subr.msk.mxu0 %vm450_vm3, %v969_v55 }
  0xd4   : > { %2681 = vmatmul.mubr.msk.f32.gmra.mrb[2].mxu0 %vm437_vm1, %v401_v56  ;;  %v1922_v58 = vpop.permute.xlu1 %1921  ;;  %v1920_v59 = vpop.permute.xlu0 %1919 }
  0xd5   : > { %2753 = vmatmul.mubr.msk.f32.gmra.mrb[2].mxu1 %vm437_vm1, %v401_v56  ;;  %v1923_v60 = vsel %vm968_vm7, %v1920_v59, %v1922_v58  ;;  %2685 = vmatprep.mubr.msk.f32.mxu0 %vm437_vm1, %v402_v57 }
  0xd6   : > { %2757 = vmatprep.mubr.msk.f32.mxu1 %vm437_vm1, %v402_v57  ;;  %2763 = vmatprep.subr.msk.mxu1 %vm450_vm3, %v1923_v60 }
  0xd8   : > { %2686 = vmatmul.mubr.msk.f32.vlgmr.msra.gmra.mrb[0].mxu0 %vm437_vm1, %v403_v61  ;;  %v1076_v63 = vpop.permute.xlu1 %1075  ;;  %v1074_v0 = vpop.permute.xlu0 %1073 }
  0xd9   : > { %2692 = vmatpush3.msk.msra.mxu0 %vm450_vm3, %v969_v55  ;;  %2758 = vmatmul.mubr.msk.f32.vlgmr.msra.gmra.mrb[0].mxu1 %vm437_vm1, %v403_v61  ;;  %v1078_v1 = vsel %vm1077_vm8, %v1074_v0, %v1076_v63 }
  0xda   : > { %2764 = vmatpush3.msk.msra.mxu1 %vm450_vm3, %v1923_v60  ;;  %2688 = vmatprep.mubr.msk.f32.mxu0 %vm437_vm1, %v404_v62 }
  0xdb   : > { %2760 = vmatprep.mubr.msk.f32.mxu1 %vm437_vm1, %v404_v62  ;;  %2699 = vmatprep.subr.msk.mxu0 %vm450_vm3, %v1078_v1 }
  0xdc   : > { %2689 = vmatmul.mubr.msk.f32.gmra.mrb[2].mxu0 %vm437_vm1, %v405_v2  ;;  %v2018_v4 = vpop.permute.xlu1 %2017  ;;  %v2016_v5 = vpop.permute.xlu0 %2015 }
  0xdd   : > { %2761 = vmatmul.mubr.msk.f32.gmra.mrb[2].mxu1 %vm437_vm1, %v405_v2  ;;  %v2019_v6 = vsel %vm1077_vm8, %v2016_v5, %v2018_v4  ;;  %2693 = vmatprep.mubr.msk.f32.mxu0 %vm437_vm1, %v406_v3 }
  0xde   : > { %2765 = vmatprep.mubr.msk.f32.mxu1 %vm437_vm1, %v406_v3  ;;  %2771 = vmatprep.subr.msk.mxu1 %vm450_vm3, %v2019_v6 }
  0xe0   : > { %2694 = vmatmul.mubr.msk.f32.vlgmr.msra.gmra.mrb[0].mxu0 %vm437_vm1, %v407_v7  ;;  %v1185_v9 = vpop.permute.xlu1 %1184  ;;  %v1183_v10 = vpop.permute.xlu0 %1182 }
  0xe1   : > { %2700 = vmatpush3.msk.msra.mxu0 %vm450_vm3, %v1078_v1  ;;  %2766 = vmatmul.mubr.msk.f32.vlgmr.msra.gmra.mrb[0].mxu1 %vm437_vm1, %v407_v7  ;;  %v1187_v11 = vsel %vm1186_vm9, %v1183_v10, %v1185_v9  ;;  %v2324_v7 = vld [vmem:[%s3171_s8 + $0x8] sm:$0xff] }
  0xe2   : > { %2772 = vmatpush3.msk.msra.mxu1 %vm450_vm3, %v2019_v6  ;;  %2696 = vmatprep.mubr.msk.f32.mxu0 %vm437_vm1, %v408_v8 }
  0xe3   : > { %2768 = vmatprep.mubr.msk.f32.mxu1 %vm437_vm1, %v408_v8  ;;  %2707 = vmatprep.subr.msk.mxu0 %vm450_vm3, %v1187_v11 }
  0xe4   : > { %2697 = vmatmul.mubr.msk.f32.gmra.mrb[2].mxu0 %vm437_vm1, %v409_v12  ;;  %v2114_v14 = vpop.permute.xlu1 %2113  ;;  %v2112_v15 = vpop.permute.xlu0 %2111 }
  0xe5   : > { %2769 = vmatmul.mubr.msk.f32.gmra.mrb[2].mxu1 %vm437_vm1, %v409_v12  ;;  %v2115_v16 = vsel %vm1186_vm9, %v2112_v15, %v2114_v14  ;;  %2701 = vmatprep.mubr.msk.f32.mxu0 %vm437_vm1, %v410_v13 }
  0xe6   : > { %2773 = vmatprep.mubr.msk.f32.mxu1 %vm437_vm1, %v410_v13  ;;  %2779 = vmatprep.subr.msk.mxu1 %vm450_vm3, %v2115_v16  ;;  %v2323_v13 = vld [vmem:[%s3171_s8] sm:$0xff] }
  0xe8   : > { %2702 = vmatmul.mubr.msk.f32.vlgmr.msra.gmra.mrb[0].mxu0 %vm437_vm1, %v411_v17  ;;  %v1294_v19 = vpop.permute.xlu1 %1293  ;;  %v1292_v20 = vpop.permute.xlu0 %1291 }
  0xe9   : > { %2708 = vmatpush3.msk.msra.mxu0 %vm450_vm3, %v1187_v11  ;;  %2774 = vmatmul.mubr.msk.f32.vlgmr.msra.gmra.mrb[0].mxu1 %vm437_vm1, %v411_v17  ;;  %v1296_v21 = vsel %vm1295_vm10, %v1292_v20, %v1294_v19  ;;  %v2325_v19 = vld [vmem:[%s3171_s8 + $0x10] sm:$0xff]  ;;  %v2326_v20 = vld [vmem:[%s3171_s8 + $0x18] sm:$0xff] }
  0xea   : > { %2780 = vmatpush3.msk.msra.mxu1 %vm450_vm3, %v2115_v16  ;;  %2704 = vmatprep.mubr.msk.f32.mxu0 %vm437_vm1, %v412_v18 }
  0xeb   : > { %2776 = vmatprep.mubr.msk.f32.mxu1 %vm437_vm1, %v412_v18  ;;  %2715 = vmatprep.subr.msk.mxu0 %vm450_vm3, %v1296_v21 }
  0xec   : > { %2705 = vmatmul.mubr.msk.f32.gmra.mrb[2].mxu0 %vm437_vm1, %v413_v22  ;;  %v2210_v24 = vpop.permute.xlu1 %2209  ;;  %v2208_v25 = vpop.permute.xlu0 %2207 }
  0xed   : > { %2777 = vmatmul.mubr.msk.f32.gmra.mrb[2].mxu1 %vm437_vm1, %v413_v22  ;;  %v2211_v26 = vsel %vm1295_vm10, %v2208_v25, %v2210_v24  ;;  %2709 = vmatprep.mubr.msk.f32.mxu0 %vm437_vm1, %v414_v23 }
  0xee   : > { %2781 = vmatprep.mubr.msk.f32.mxu1 %vm437_vm1, %v414_v23  ;;  %2787 = vmatprep.subr.msk.mxu1 %vm450_vm3, %v2211_v26 }
  0xf0   : > { %2710 = vmatmul.mubr.msk.f32.vlgmr.msra.gmra.mrb[0].mxu0 %vm437_vm1, %v415_v27 }
  0xf1   : > { %2716 = vmatpush3.msk.msra.mxu0 %vm450_vm3, %v1296_v21  ;;  %2782 = vmatmul.mubr.msk.f32.vlgmr.msra.gmra.mrb[0].mxu1 %vm437_vm1, %v415_v27 }
  0xf2   : > { %2788 = vmatpush3.msk.msra.mxu1 %vm450_vm3, %v2211_v26  ;;  %2712 = vmatprep.mubr.msk.f32.mxu0 %vm437_vm1, %v416_v28 }
  0xf3   : > { %2784 = vmatprep.mubr.msk.f32.mxu1 %vm437_vm1, %v416_v28 }
  0xf4   : > { %2713 = vmatmul.mubr.msk.f32.gmra.mrb[2].mxu0 %vm437_vm1, %v417_v29 }
  0xf5   : > { %2785 = vmatmul.mubr.msk.f32.gmra.mrb[2].mxu1 %vm437_vm1, %v417_v29  ;;  %2717 = vmatprep.mubr.msk.f32.mxu0 %vm437_vm1, %v418_v30 }
  0xf6   : > { %2789 = vmatprep.mubr.msk.f32.mxu1 %vm437_vm1, %v418_v30 }
  0xf8   : > { %2718 = vmatmul.mubr.msk.f32.vlgmr.msra.gmra.mrb[0].mxu0 %vm437_vm1, %v419_v31 }
  0xf9   : > { %2790 = vmatmul.mubr.msk.f32.vlgmr.msra.gmra.mrb[0].mxu1 %vm437_vm1, %v419_v31  ;;  %2720 = vmatprep.mubr.msk.f32.mxu0 %vm437_vm1, %v420_v32 }
  0xfa   : > { %2792 = vmatprep.mubr.msk.f32.mxu1 %vm437_vm1, %v420_v32 }
  0xfc   : > { %2721 = vmatmul.mubr.msk.f32.gmra.mrb[2].mxu0 %vm437_vm1, %v421_v33 }
  0xfd   : > { %2793 = vmatmul.mubr.msk.f32.gmra.mrb[2].mxu1 %vm437_vm1, %v421_v33  ;;  %v1403_v34 = vpop.permute.xlu0 %1402  ;;  %v1408_v35 = vpop.permute.xlu1 %1407 }
 0x101   : > { %v1418_v46 = vpop.permute.xlu0 %1417  ;;  %v1413_v48 = vpop.permute.xlu1 %1412 }
 0x1cb   : > { %v2719_v36 = vpop.f32.mrb[0].mxu0 }
 0x1cc   : > { %v1421_v37 = vadd.f32 %v2719_v36, %v1408_v35  ;;  %v2791_v38 = vpop.f32.mrb[0].mxu1  ;;  %v1377_v39 = vpop.f32.mrb[1].mxu0 }
 0x1cd   : > { %v2304_v40 = vadd.f32 %v2791_v38, %v1408_v35  ;;  %v1420_v41 = vadd.f32 %v1403_v34, %v1377_v39  ;;  %v2280_v42 = vpop.f32.mrb[1].mxu1 }
 0x1ce   : > { %v1425_v44 = vmax.f32 %v1421_v37, 0.0  ;;  %v2303_v45 = vadd.f32 %v2280_v42, %v1403_v34 }
 0x1cf   : > { %v2308_v47 = vmax.f32 %v2304_v40, 0.0  ;;  %v2722_v49 = vpop.f32.mrb[2].mxu0  ;;  %v1424_v54 = vmax.f32 %v1420_v41, 0.0 }
 0x1d0   : > { %v2307_v50 = vmax.f32 %v2303_v45, 0.0  ;;  %v2794_v51 = vpop.f32.mrb[2].mxu1  ;;  %v1387_v52 = vpop.f32.mrb[3].mxu0  ;;  %v1435_v53 = vmul.f32 %v2509_v43, %v1425_v44  ;;  %v1423_v55 = vadd.f32 %v2722_v49, %v1418_v46 }
 0x1d1   : > { %v1422_v56 = vadd.f32 %v1413_v48, %v1387_v52  ;;  %v2290_v57 = vpop.f32.mrb[3].mxu1  ;;  %v2312_v58 = vmul.f32 %v2509_v43, %v2308_v47  ;;  %v2306_v63 = vadd.f32 %v2794_v51, %v1418_v46  ;;  %v1434_v0 = vmul.f32 %v2509_v43, %v1424_v54 }
 0x1d2   : > { %1440 = vadd.xlane.f32.xlu0 %v1435_v53  ;;  %v2305_v60 = vadd.f32 %v2290_v57, %v1413_v48  ;;  %v2311_v61 = vmul.f32 %v2509_v43, %v2307_v50  ;;  %v1427_v62 = vmax.f32 %v1423_v55, 0.0 }
 0x1d3   : > { %2317 = vadd.xlane.f32.xlu1 %v2312_v58  ;;  %v1426_v59 = vmax.f32 %v1422_v56, 0.0  ;;  %v2310_v3 = vmax.f32 %v2306_v63, 0.0 }
 0x1d4   : > { %v2309_v1 = vmax.f32 %v2305_v60, 0.0  ;;  %v1437_v4 = vmul.f32 %v2509_v43, %v1427_v62 }
 0x1d5   : > { %v1436_v2 = vmul.f32 %v2509_v43, %v1426_v59  ;;  %v2314_v6 = vmul.f32 %v2509_v43, %v2310_v3 }
 0x1d6   : > { %2315 = vadd.xlane.f32.xlu0 %v2311_v61  ;;  %v2313_v5 = vmul.f32 %v2509_v43, %v2309_v1 }
 0x1d7   : > { %1438 = vadd.xlane.f32.xlu1 %v1434_v0 }
 0x1da   : > { %1442 = vadd.xlane.f32.xlu0 %v1436_v2 }
 0x1db   : > { %1444 = vadd.xlane.f32.xlu1 %v1437_v4 }
 0x1de   : > { %2319 = vadd.xlane.f32.xlu0 %v2313_v5 }
 0x1df   : > { %2321 = vadd.xlane.f32.xlu1 %v2314_v6 }
 0x25f   : > { %v1441_v8 = vpop.xlane.xlu0 %1440 }
 0x260   : > { %v2318_v9 = vpop.xlane.xlu1 %2317 }
 0x261   : > { %v2329_v10 = vsel %vm2327_vm11, %v1441_v8, %v2318_v9 }
 0x262   : > { %v2333_v11 = vadd.f32 %v2329_v10, %v2324_v7 }
 0x263   : > { %v2316_v12 = vpop.xlane.xlu0 %2315 }
 0x264   : > { %2338 = vst.msk [vmem:[%s3171_s8 + $0x8] sm:$0xff] %vm2336_vm12, %v2333_v11  ;;  %v1439_v14 = vpop.xlane.xlu1 %1438 }
 0x265   : > { %v2328_v15 = vsel %vm2327_vm11, %v1439_v14, %v2316_v12 }
 0x266   : > { %v2332_v16 = vadd.f32 %v2328_v15, %v2323_v13 }
 0x267   : > { %v1443_v17 = vpop.xlane.xlu0 %1442 }
 0x268   : > { %2337 = vst.msk [vmem:[%s3171_s8] sm:$0xff] %vm2336_vm12, %v2332_v16  ;;  %v1445_v18 = vpop.xlane.xlu1 %1444 }
 0x26b   : > { %v2320_v21 = vpop.xlane.xlu0 %2319 }
 0x26c   : > { %v2322_v22 = vpop.xlane.xlu1 %2321  ;;  %v2330_v23 = vsel %vm2327_vm11, %v1443_v17, %v2320_v21 }
 0x26d   : > { %v2331_v24 = vsel %vm2327_vm11, %v1445_v18, %v2322_v22  ;;  %v2334_v25 = vadd.f32 %v2330_v23, %v2325_v19 }
 0x26e   : > { %v2335_v26 = vadd.f32 %v2331_v24, %v2326_v20 }
 0x26f   : > { %2339 = vst.msk [vmem:[%s3171_s8 + $0x10] sm:$0xff] %vm2336_vm12, %v2334_v25 }
 0x270   : > { %2340 = vst.msk [vmem:[%s3171_s8 + $0x18] sm:$0xff] %vm2336_vm12, %v2335_v26 }
 0x271 PF: > { %s15_s26 = sadd.s32 1, %s3013_s26   ;;  %s3502_s11 = sld [smem:[#allocation4_spill]] }
 0x272   : > { %p12_p2 = scmp.ge.s32.totalorder %s15_s26, 8   ;;  %s3503_s18 = smov %s2985_s19 }
 0x273   : > { %s3504_s19 = smov %s3135_s16  ;;  %s3505_s20 = smov %s2993_s21 }
 0x274   : > { %s3506_s21 = smov %s3132_s15  ;;  %s3507_s22 = smov %s3005_s24 }
 0x275   : > { %s3508_s23 = smov %s3009_s25  ;;  %s3509_s24 = smov %s3105_s29 }
 0x276   :  { %14 = sbr.rel (!%p12_p2) target bundleno = 5 (0x5), region = 174 }
 0x277   : > { %s3510_s25 = smov %s3502_s11 }

</bundles_post_ra>
